<compile_context>
chip_gen: v5e
topology: v5e:2x2
jax: 0.10.0
libtpu: 0.0.40
codegen_flags: <defaults>
</compile_context>

<pallas_src>
import functools
import numpy as np
import jax
import jax.numpy as jnp
from jax.experimental import pallas as pl
from jax.experimental.pallas import tpu as pltpu

# ----------------------------- config -----------------------------
BATCH       = 2
SHAPE       = (16, 16, 4)          # (H, W, C) as in the module's `shape` arg
KERNEL_SIZE = [2, 2, 4]
STRIDE      = [2, 2, 1]
CONV_DIM    = [16, 32, 128]
# activation = ReLU (after EVERY conv, including the last)

H0, W0, C_IN = SHAPE
K1, K2, K3   = KERNEL_SIZE
C1, C2, C3   = CONV_DIM
T2           = K2 * K2             # layer-2 taps (folded into layer-1 matmul)
T3           = K3 * K3             # layer-3 taps (folded into layer-3 matmul)
G            = H0 // (K1 * K2)     # spatial extent after layer 2 (= 4 = K3)
F0           = T2 * K1 * K1 * C_IN # features per patch row (= 64)
OUTPUT_DIM   = 1 * 1 * C3

# The fused decomposition relies on this exact structure.
assert H0 == W0 and STRIDE[0] == K1 and STRIDE[1] == K2
assert STRIDE[2] == 1 and K3 == G


# --------------------------- Pallas kernel -------------------------
def _encoder_kernel(x0_ref, w1_ref, b1_ref, w2_ref, b2_ref, w3_ref, b3_ref,
                    o_ref, h2_ref, h2f_ref, *, taps3, bt):
    """Whole ConvEncoder forward for one batch tile (all VMEM resident).

    x0_ref : (T3*bt, F0)       patchified input rows, row = (i2, j2, n)
    w1_ref : (F0, T2*C1)       block-diagonal layer-1 weight;  b1_ref (1, T2*C1)
    w2_ref : (T2*C1, C2)       flattened layer-2 weight;       b2_ref (1, C2)
    w3_ref : (T3*C2, C3)       flattened layer-3 weight;       b3_ref (1, C3)
    o_ref  : (bt, C3)
    h2_ref : VMEM (T3*bt, C2)  layer-2 result, rows = (tap3, n)
    h2f_ref: VMEM (bt, T3*C2)  layer-2 result, lane-contiguous per batch row
    """
    # Layer 1 (+ all T2 layer-2 taps at once via the block-diagonal weight):
    # one (T3*bt, 64) @ (64, 64) matmul.
    h1 = jnp.dot(x0_ref[...], w1_ref[...], preferred_element_type=jnp.float32)
    h1 = jnp.maximum(h1 + b1_ref[...], 0.0)                  # (T3*bt, T2*C1)

    # Layer 2: ONE K=64 matmul over all taps (no tap loop, no VPU accumulate).
    h2 = jnp.dot(h1, w2_ref[...], preferred_element_type=jnp.float32)
    h2_ref[...] = jnp.maximum(h2 + b2_ref[...], 0.0)          # (T3*bt, C2)

    # Relayout layer-3 taps from sublanes to lanes: (T3*bt, C2) -> (bt, T3*C2),
    # tiny in-VMEM copies only (no HBM round trip), so layer 3 collapses to a
    # single big-K matmul with accumulation kept inside the MXU.
    c2 = h2_ref.shape[1]
    for t in range(taps3):                                    # static unroll (16)
        h2f_ref[:, t * c2:(t + 1) * c2] = h2_ref[pl.ds(t * bt, bt), :]

    # Layer 3: ONE (bt, 512) @ (512, 128) matmul; lane-dense (128) output.
    o = jnp.dot(h2f_ref[...], w3_ref[...], preferred_element_type=jnp.float32)
    o_ref[...] = jnp.maximum(o + b3_ref[...], 0.0).astype(o_ref.dtype)


def _encoder_pallas(x0, w1bd, b1t, w2f, b2r, w3f, b3r, *, bt, nt):
    rows = G * G * bt                      # patch rows per batch tile
    kernel = functools.partial(_encoder_kernel, taps3=T3, bt=bt)
    return pl.pallas_call(
        kernel,
        out_shape=jax.ShapeDtypeStruct((nt * bt, C3), jnp.float32),
        grid=(nt,),
        in_specs=[
            pl.BlockSpec((rows, F0), lambda i: (i, 0)),
            pl.BlockSpec(w1bd.shape, lambda i: (0, 0)),
            pl.BlockSpec(b1t.shape,  lambda i: (0, 0)),
            pl.BlockSpec(w2f.shape,  lambda i: (0, 0)),
            pl.BlockSpec(b2r.shape,  lambda i: (0, 0)),
            pl.BlockSpec(w3f.shape,  lambda i: (0, 0)),
            pl.BlockSpec(b3r.shape,  lambda i: (0, 0)),
        ],
        out_specs=pl.BlockSpec((bt, C3), lambda i: (i, 0)),
        scratch_shapes=[
            pltpu.VMEM((rows, C2), jnp.float32),       # h2, rows = (tap3, n)
            pltpu.VMEM((bt, T3 * C2), jnp.float32),    # h2 lane-contiguous
        ],
        compiler_params=pltpu.CompilerParams(
            dimension_semantics=("parallel",)),
    )(x0, w1bd, b1t, w2f, b2r, w3f, b3r)


# ------------------------------ glue -------------------------------
def pack_params(params):
    """One-time weight relayout (PyTorch Conv2d layout -> kernel matmul layout)."""
    (w1, b1, _), (w2, b2, _), (w3, b3, _) = params["convs"]
    # (O, C, KH, KW) -> rows (kh, kw, c) x cols (o)
    w1m  = jnp.transpose(w1, (2, 3, 1, 0)).reshape(K1 * K1 * C_IN, C1)  # (16,16)
    w1bd = jnp.kron(jnp.eye(T2, dtype=w1m.dtype), w1m)                  # (64,64)
    b1t  = jnp.tile(b1, (T2,)).reshape(1, T2 * C1)                      # (1,64)
    w2f  = jnp.transpose(w2, (2, 3, 1, 0)).reshape(T2 * C1, C2)         # (64,32)
    b2r  = b2.reshape(1, C2)
    w3f  = jnp.transpose(w3, (2, 3, 1, 0)).reshape(T3 * C2, C3)         # (512,128)
    b3r  = b3.reshape(1, C3)
    return (w1bd, b1t, w2f, b2r, w3f, b3r)


@jax.jit
def conv_encoder_forward(ob, packed):
    """ConvEncoder.forward: ob (..., C, H, W) NCHW -> (..., output_dim)."""
    lead = ob.shape[:-3]
    x = ob.reshape((-1,) + ob.shape[-3:])                    # (B, C, H, W)
    B = x.shape[0]
    bt = 8 if (B >= 8 and B % 8 == 0) else B                 # 8-row out tiles when possible
    nt = B // bt

    # Hierarchical space-to-depth permutation (one small fused transpose under
    # jit): rows ordered (tile, i2, j2, n), features (p2, q2, kh1, kw1, c) so
    # every layer's contraction is a contiguous, lane-dense matmul in-kernel.
    # TODO(synk): could assemble these rows in-kernel from the raw NCHW block
    # to drop this producer op entirely; kept in the (jitted) glue for safety.
    x = jnp.transpose(x, (0, 2, 3, 1))                       # (B, H, W, C)
    x = x.reshape(nt, bt, G, K2, K1, G, K2, K1, C_IN)        # (nt,n,i2,p2,kh1,j2,q2,kw1,c)
    x = jnp.transpose(x, (0, 2, 5, 1, 3, 6, 4, 7, 8))        # (nt,i2,j2,n,p2,q2,kh1,kw1,c)
    x0 = x.reshape(nt * G * G * bt, F0)                      # (32, 64) at B=2

    out = _encoder_pallas(x0, *packed, bt=bt, nt=nt)         # (B, C3)
    # Final spatial map is 1x1, so the NCHW flatten is just the channel vector.
    return out.reshape(lead + (-1,))


# ----------------------- numpy reference (checks) -------------------
def _conv2d_ref_np(x, w, b, s):
    # x: (N, C, H, W), w: (O, C, K, K), stride s, padding 0 (PyTorch default)
    N, C, H, W = x.shape
    O, _, K, _ = w.shape
    Ho, Wo = (H - K) // s + 1, (W - K) // s + 1
    out = np.zeros((N, O, Ho, Wo), np.float32)
    for i in range(Ho):
        for j in range(Wo):
            patch = x[:, :, i * s:i * s + K, j * s:j * s + K]
            out[:, :, i, j] = np.einsum("nckl,ockl->no", patch, w)
    return out + b[None, :, None, None]


def ref_encoder_np(ob, params):
    x = np.asarray(ob, np.float32)
    for (w, b, s) in params["convs"]:
        x = _conv2d_ref_np(x, np.asarray(w), np.asarray(b), s)
        x = np.maximum(x, 0.0)                               # ReLU after every conv
    return x.reshape(x.shape[0], -1)


# ------------------------------- main --------------------------------
if __name__ == "__main__":
    key = jax.random.PRNGKey(0)
    ks = jax.random.split(key, 8)

    convs = []
    d_prev = C_IN
    for li, (k, s, d) in enumerate(zip(KERNEL_SIZE, STRIDE, CONV_DIM)):
        w = (jax.random.normal(ks[2 * li], (d, d_prev, k, k), jnp.float32)
             / np.sqrt(d_prev * k * k))
        b = 0.01 * jax.random.normal(ks[2 * li + 1], (d,), jnp.float32)
        convs.append((w, b, s))
        d_prev = d
    params = {"convs": convs}

    ob = jax.random.normal(ks[7], (BATCH, C_IN, H0, W0), jnp.float32)

    packed = pack_params(params)                 # one-time weight relayout
    out = conv_encoder_forward(ob, packed)
    out = jax.block_until_ready(out)

    assert out.shape == (BATCH, OUTPUT_DIM), out.shape

    ref = ref_encoder_np(np.asarray(ob), params)
    if not np.allclose(np.asarray(out), ref, rtol=1e-2, atol=1e-2):
        raise AssertionError("Pallas ConvEncoder mismatch vs numpy reference")

    # TODO(synk): torch's weight_init (orthogonal init) is training-time setup,
    # not part of the forward pass; random weights are used here instead.
    print("KERNEL_OK")
</pallas_src>

<mosaic_0001>
module attributes {stable_mosaic.version = 11 : i64} {
  func.func @_encoder_kernel(%arg0: i32, %arg1: memref<32x64xf32, #tpu.memory_space<vmem>>, %arg2: memref<64x64xf32, #tpu.memory_space<vmem>>, %arg3: memref<1x64xf32, #tpu.memory_space<vmem>>, %arg4: memref<64x32xf32, #tpu.memory_space<vmem>>, %arg5: memref<1x32xf32, #tpu.memory_space<vmem>>, %arg6: memref<512x128xf32, #tpu.memory_space<vmem>>, %arg7: memref<1x128xf32, #tpu.memory_space<vmem>>, %arg8: memref<2x128xf32, #tpu.memory_space<vmem>>, %arg9: memref<32x32xf32, #tpu.memory_space<vmem>>, %arg10: memref<2x512xf32, #tpu.memory_space<vmem>>) attributes {dimension_semantics = [#tpu.dimension_semantics<parallel>], iteration_bounds = array<i64: 1>, scalar_prefetch = 0 : i64, scratch_operands = 2 : i64, tpu.core_type = #tpu.core_type<tc>, window_params = [{transform_indices = @transform_0, window_bounds = array<i64: 32, 64>}, {pipeline_mode = #tpu.pipeline_mode<synchronous>, transform_indices = @transform_1, window_bounds = array<i64: 64, 64>}, {pipeline_mode = #tpu.pipeline_mode<synchronous>, transform_indices = @transform_2, window_bounds = array<i64: 1, 64>}, {pipeline_mode = #tpu.pipeline_mode<synchronous>, transform_indices = @transform_3, window_bounds = array<i64: 64, 32>}, {pipeline_mode = #tpu.pipeline_mode<synchronous>, transform_indices = @transform_4, window_bounds = array<i64: 1, 32>}, {pipeline_mode = #tpu.pipeline_mode<synchronous>, transform_indices = @transform_5, window_bounds = array<i64: 512, 128>}, {pipeline_mode = #tpu.pipeline_mode<synchronous>, transform_indices = @transform_6, window_bounds = array<i64: 1, 128>}, {transform_indices = @transform_7, window_bounds = array<i64: 2, 128>}]} {
    %c0 = arith.constant 0 : index
    %c0_0 = arith.constant 0 : index
    %0 = vector.load %arg1[%c0, %c0_0] : memref<32x64xf32, #tpu.memory_space<vmem>>, vector<32x64xf32>
    %c0_1 = arith.constant 0 : index
    %c0_2 = arith.constant 0 : index
    %1 = vector.load %arg2[%c0_1, %c0_2] : memref<64x64xf32, #tpu.memory_space<vmem>>, vector<64x64xf32>
    %cst = arith.constant dense<0.000000e+00> : vector<32x64xf32>
    %2 = tpu.matmul %0, %1, %cst {dimension_numbers = #tpu.dot_dimension_numbers<[1], [0], [0], [1], [0, 0, 1, 1], [], []>} : vector<32x64xf32>, vector<64x64xf32>, vector<32x64xf32> -> vector<32x64xf32>
    %c0_3 = arith.constant 0 : index
    %c0_4 = arith.constant 0 : index
    %3 = vector.load %arg3[%c0_3, %c0_4] : memref<1x64xf32, #tpu.memory_space<vmem>>, vector<1x64xf32>
    %4 = vector.broadcast %3 : vector<1x64xf32> to vector<32x64xf32>
    %5 = arith.addf %2, %4 : vector<32x64xf32>
    %cst_5 = arith.constant 0.000000e+00 : f32
    %6 = vector.broadcast %cst_5 : f32 to vector<32x64xf32>
    %7 = arith.maximumf %5, %6 : vector<32x64xf32>
    %c0_6 = arith.constant 0 : index
    %c0_7 = arith.constant 0 : index
    %8 = vector.load %arg4[%c0_6, %c0_7] : memref<64x32xf32, #tpu.memory_space<vmem>>, vector<64x32xf32>
    %cst_8 = arith.constant dense<0.000000e+00> : vector<32x32xf32>
    %9 = tpu.matmul %7, %8, %cst_8 {dimension_numbers = #tpu.dot_dimension_numbers<[1], [0], [0], [1], [0, 0, 1, 1], [], []>} : vector<32x64xf32>, vector<64x32xf32>, vector<32x32xf32> -> vector<32x32xf32>
    %c0_9 = arith.constant 0 : index
    %c0_10 = arith.constant 0 : index
    %10 = vector.load %arg5[%c0_9, %c0_10] : memref<1x32xf32, #tpu.memory_space<vmem>>, vector<1x32xf32>
    %11 = vector.broadcast %10 : vector<1x32xf32> to vector<32x32xf32>
    %12 = arith.addf %9, %11 : vector<32x32xf32>
    %cst_11 = arith.constant 0.000000e+00 : f32
    %13 = vector.broadcast %cst_11 : f32 to vector<32x32xf32>
    %14 = arith.maximumf %12, %13 : vector<32x32xf32>
    %c0_12 = arith.constant 0 : index
    %c0_13 = arith.constant 0 : index
    %15 = vector.load %arg9[%c0_12, %c0_13] : memref<32x32xf32, #tpu.memory_space<vmem>>, vector<32x32xf32>
    tpu.vector_store %arg9[%c0_12, %c0_13], %14 {strides = array<i32>} : memref<32x32xf32, #tpu.memory_space<vmem>>, vector<32x32xf32>,
    %c0_14 = arith.constant 0 : index
    %c0_15 = arith.constant 0 : index
    %16 = vector.load %arg9[%c0_14, %c0_15] : memref<32x32xf32, #tpu.memory_space<vmem>>, vector<2x32xf32>
    %c0_16 = arith.constant 0 : index
    %c0_17 = arith.constant 0 : index
    %17 = vector.load %arg10[%c0_16, %c0_17] : memref<2x512xf32, #tpu.memory_space<vmem>>, vector<2x32xf32>
    tpu.vector_store %arg10[%c0_16, %c0_17], %16 {strides = array<i32>} : memref<2x512xf32, #tpu.memory_space<vmem>>, vector<2x32xf32>,
    %c2 = arith.constant 2 : index
    %c0_18 = arith.constant 0 : index
    %18 = vector.load %arg9[%c2, %c0_18] : memref<32x32xf32, #tpu.memory_space<vmem>>, vector<2x32xf32>
    %c0_19 = arith.constant 0 : index
    %c32 = arith.constant 32 : index
    %19 = vector.load %arg10[%c0_19, %c32] : memref<2x512xf32, #tpu.memory_space<vmem>>, vector<2x32xf32>
    tpu.vector_store %arg10[%c0_19, %c32], %18 {strides = array<i32>} : memref<2x512xf32, #tpu.memory_space<vmem>>, vector<2x32xf32>,
    %c4 = arith.constant 4 : index
    %c0_20 = arith.constant 0 : index
    %20 = vector.load %arg9[%c4, %c0_20] : memref<32x32xf32, #tpu.memory_space<vmem>>, vector<2x32xf32>
    %c0_21 = arith.constant 0 : index
    %c64 = arith.constant 64 : index
    %21 = vector.load %arg10[%c0_21, %c64] : memref<2x512xf32, #tpu.memory_space<vmem>>, vector<2x32xf32>
    tpu.vector_store %arg10[%c0_21, %c64], %20 {strides = array<i32>} : memref<2x512xf32, #tpu.memory_space<vmem>>, vector<2x32xf32>,
    %c6 = arith.constant 6 : index
    %c0_22 = arith.constant 0 : index
    %22 = vector.load %arg9[%c6, %c0_22] : memref<32x32xf32, #tpu.memory_space<vmem>>, vector<2x32xf32>
    %c0_23 = arith.constant 0 : index
    %c96 = arith.constant 96 : index
    %23 = vector.load %arg10[%c0_23, %c96] : memref<2x512xf32, #tpu.memory_space<vmem>>, vector<2x32xf32>
    tpu.vector_store %arg10[%c0_23, %c96], %22 {strides = array<i32>} : memref<2x512xf32, #tpu.memory_space<vmem>>, vector<2x32xf32>,
    %c8 = arith.constant 8 : index
    %c0_24 = arith.constant 0 : index
    %24 = vector.load %arg9[%c8, %c0_24] : memref<32x32xf32, #tpu.memory_space<vmem>>, vector<2x32xf32>
    %c0_25 = arith.constant 0 : index
    %c128 = arith.constant 128 : index
    %25 = vector.load %arg10[%c0_25, %c128] : memref<2x512xf32, #tpu.memory_space<vmem>>, vector<2x32xf32>
    tpu.vector_store %arg10[%c0_25, %c128], %24 {strides = array<i32>} : memref<2x512xf32, #tpu.memory_space<vmem>>, vector<2x32xf32>,
    %c10 = arith.constant 10 : index
    %c0_26 = arith.constant 0 : index
    %26 = vector.load %arg9[%c10, %c0_26] : memref<32x32xf32, #tpu.memory_space<vmem>>, vector<2x32xf32>
    %c0_27 = arith.constant 0 : index
    %c160 = arith.constant 160 : index
    %27 = vector.load %arg10[%c0_27, %c160] : memref<2x512xf32, #tpu.memory_space<vmem>>, vector<2x32xf32>
    tpu.vector_store %arg10[%c0_27, %c160], %26 {strides = array<i32>} : memref<2x512xf32, #tpu.memory_space<vmem>>, vector<2x32xf32>,
    %c12 = arith.constant 12 : index
    %c0_28 = arith.constant 0 : index
    %28 = vector.load %arg9[%c12, %c0_28] : memref<32x32xf32, #tpu.memory_space<vmem>>, vector<2x32xf32>
    %c0_29 = arith.constant 0 : index
    %c192 = arith.constant 192 : index
    %29 = vector.load %arg10[%c0_29, %c192] : memref<2x512xf32, #tpu.memory_space<vmem>>, vector<2x32xf32>
    tpu.vector_store %arg10[%c0_29, %c192], %28 {strides = array<i32>} : memref<2x512xf32, #tpu.memory_space<vmem>>, vector<2x32xf32>,
    %c14 = arith.constant 14 : index
    %c0_30 = arith.constant 0 : index
    %30 = vector.load %arg9[%c14, %c0_30] : memref<32x32xf32, #tpu.memory_space<vmem>>, vector<2x32xf32>
    %c0_31 = arith.constant 0 : index
    %c224 = arith.constant 224 : index
    %31 = vector.load %arg10[%c0_31, %c224] : memref<2x512xf32, #tpu.memory_space<vmem>>, vector<2x32xf32>
    tpu.vector_store %arg10[%c0_31, %c224], %30 {strides = array<i32>} : memref<2x512xf32, #tpu.memory_space<vmem>>, vector<2x32xf32>,
    %c16 = arith.constant 16 : index
    %c0_32 = arith.constant 0 : index
    %32 = vector.load %arg9[%c16, %c0_32] : memref<32x32xf32, #tpu.memory_space<vmem>>, vector<2x32xf32>
    %c0_33 = arith.constant 0 : index
    %c256 = arith.constant 256 : index
    %33 = vector.load %arg10[%c0_33, %c256] : memref<2x512xf32, #tpu.memory_space<vmem>>, vector<2x32xf32>
    tpu.vector_store %arg10[%c0_33, %c256], %32 {strides = array<i32>} : memref<2x512xf32, #tpu.memory_space<vmem>>, vector<2x32xf32>,
    %c18 = arith.constant 18 : index
    %c0_34 = arith.constant 0 : index
    %34 = vector.load %arg9[%c18, %c0_34] : memref<32x32xf32, #tpu.memory_space<vmem>>, vector<2x32xf32>
    %c0_35 = arith.constant 0 : index
    %c288 = arith.constant 288 : index
    %35 = vector.load %arg10[%c0_35, %c288] : memref<2x512xf32, #tpu.memory_space<vmem>>, vector<2x32xf32>
    tpu.vector_store %arg10[%c0_35, %c288], %34 {strides = array<i32>} : memref<2x512xf32, #tpu.memory_space<vmem>>, vector<2x32xf32>,
    %c20 = arith.constant 20 : index
    %c0_36 = arith.constant 0 : index
    %36 = vector.load %arg9[%c20, %c0_36] : memref<32x32xf32, #tpu.memory_space<vmem>>, vector<2x32xf32>
    %c0_37 = arith.constant 0 : index
    %c320 = arith.constant 320 : index
    %37 = vector.load %arg10[%c0_37, %c320] : memref<2x512xf32, #tpu.memory_space<vmem>>, vector<2x32xf32>
    tpu.vector_store %arg10[%c0_37, %c320], %36 {strides = array<i32>} : memref<2x512xf32, #tpu.memory_space<vmem>>, vector<2x32xf32>,
    %c22 = arith.constant 22 : index
    %c0_38 = arith.constant 0 : index
    %38 = vector.load %arg9[%c22, %c0_38] : memref<32x32xf32, #tpu.memory_space<vmem>>, vector<2x32xf32>
    %c0_39 = arith.constant 0 : index
    %c352 = arith.constant 352 : index
    %39 = vector.load %arg10[%c0_39, %c352] : memref<2x512xf32, #tpu.memory_space<vmem>>, vector<2x32xf32>
    tpu.vector_store %arg10[%c0_39, %c352], %38 {strides = array<i32>} : memref<2x512xf32, #tpu.memory_space<vmem>>, vector<2x32xf32>,
    %c24 = arith.constant 24 : index
    %c0_40 = arith.constant 0 : index
    %40 = vector.load %arg9[%c24, %c0_40] : memref<32x32xf32, #tpu.memory_space<vmem>>, vector<2x32xf32>
    %c0_41 = arith.constant 0 : index
    %c384 = arith.constant 384 : index
    %41 = vector.load %arg10[%c0_41, %c384] : memref<2x512xf32, #tpu.memory_space<vmem>>, vector<2x32xf32>
    tpu.vector_store %arg10[%c0_41, %c384], %40 {strides = array<i32>} : memref<2x512xf32, #tpu.memory_space<vmem>>, vector<2x32xf32>,
    %c26 = arith.constant 26 : index
    %c0_42 = arith.constant 0 : index
    %42 = vector.load %arg9[%c26, %c0_42] : memref<32x32xf32, #tpu.memory_space<vmem>>, vector<2x32xf32>
    %c0_43 = arith.constant 0 : index
    %c416 = arith.constant 416 : index
    %43 = vector.load %arg10[%c0_43, %c416] : memref<2x512xf32, #tpu.memory_space<vmem>>, vector<2x32xf32>
    tpu.vector_store %arg10[%c0_43, %c416], %42 {strides = array<i32>} : memref<2x512xf32, #tpu.memory_space<vmem>>, vector<2x32xf32>,
    %c28 = arith.constant 28 : index
    %c0_44 = arith.constant 0 : index
    %44 = vector.load %arg9[%c28, %c0_44] : memref<32x32xf32, #tpu.memory_space<vmem>>, vector<2x32xf32>
    %c0_45 = arith.constant 0 : index
    %c448 = arith.constant 448 : index
    %45 = vector.load %arg10[%c0_45, %c448] : memref<2x512xf32, #tpu.memory_space<vmem>>, vector<2x32xf32>
    tpu.vector_store %arg10[%c0_45, %c448], %44 {strides = array<i32>} : memref<2x512xf32, #tpu.memory_space<vmem>>, vector<2x32xf32>,
    %c30 = arith.constant 30 : index
    %c0_46 = arith.constant 0 : index
    %46 = vector.load %arg9[%c30, %c0_46] : memref<32x32xf32, #tpu.memory_space<vmem>>, vector<2x32xf32>
    %c0_47 = arith.constant 0 : index
    %c480 = arith.constant 480 : index
    %47 = vector.load %arg10[%c0_47, %c480] : memref<2x512xf32, #tpu.memory_space<vmem>>, vector<2x32xf32>
    tpu.vector_store %arg10[%c0_47, %c480], %46 {strides = array<i32>} : memref<2x512xf32, #tpu.memory_space<vmem>>, vector<2x32xf32>,
    %c0_48 = arith.constant 0 : index
    %c0_49 = arith.constant 0 : index
    %48 = vector.load %arg10[%c0_48, %c0_49] : memref<2x512xf32, #tpu.memory_space<vmem>>, vector<2x512xf32>
    %c0_50 = arith.constant 0 : index
    %c0_51 = arith.constant 0 : index
    %49 = vector.load %arg6[%c0_50, %c0_51] : memref<512x128xf32, #tpu.memory_space<vmem>>, vector<512x128xf32>
    %cst_52 = arith.constant dense<0.000000e+00> : vector<2x128xf32>
    %50 = tpu.matmul %48, %49, %cst_52 {dimension_numbers = #tpu.dot_dimension_numbers<[1], [0], [0], [1], [0, 0, 1, 1], [], []>} : vector<2x512xf32>, vector<512x128xf32>, vector<2x128xf32> -> vector<2x128xf32>
    %c0_53 = arith.constant 0 : index
    %c0_54 = arith.constant 0 : index
    %51 = vector.load %arg7[%c0_53, %c0_54] : memref<1x128xf32, #tpu.memory_space<vmem>>, vector<1x128xf32>
    %52 = vector.broadcast %51 : vector<1x128xf32> to vector<2x128xf32>
    %53 = arith.addf %50, %52 : vector<2x128xf32>
    %cst_55 = arith.constant 0.000000e+00 : f32
    %54 = vector.broadcast %cst_55 : f32 to vector<2x128xf32>
    %55 = arith.maximumf %53, %54 : vector<2x128xf32>
    %c0_56 = arith.constant 0 : index
    %c0_57 = arith.constant 0 : index
    %56 = vector.load %arg8[%c0_56, %c0_57] : memref<2x128xf32, #tpu.memory_space<vmem>>, vector<2x128xf32>
    tpu.vector_store %arg8[%c0_56, %c0_57], %55 {strides = array<i32>} : memref<2x128xf32, #tpu.memory_space<vmem>>, vector<2x128xf32>,
    return
  }
  func.func @transform_0(%arg0: i32) -> (i32, i32) {
    %c0_i32 = arith.constant 0 : i32
    %c0_i32_0 = arith.constant 0 : i32
    return %arg0, %c0_i32 : i32, i32
  }
  func.func @transform_1(%arg0: i32) -> (i32, i32) {
    %c0_i32 = arith.constant 0 : i32
    %c0_i32_0 = arith.constant 0 : i32
    %c0_i32_1 = arith.constant 0 : i32
    return %c0_i32, %c0_i32_0 : i32, i32
  }
  func.func @transform_2(%arg0: i32) -> (i32, i32) {
    %c0_i32 = arith.constant 0 : i32
    %c0_i32_0 = arith.constant 0 : i32
    %c0_i32_1 = arith.constant 0 : i32
    return %c0_i32, %c0_i32_0 : i32, i32
  }
  func.func @transform_3(%arg0: i32) -> (i32, i32) {
    %c0_i32 = arith.constant 0 : i32
    %c0_i32_0 = arith.constant 0 : i32
    %c0_i32_1 = arith.constant 0 : i32
    return %c0_i32, %c0_i32_0 : i32, i32
  }
  func.func @transform_4(%arg0: i32) -> (i32, i32) {
    %c0_i32 = arith.constant 0 : i32
    %c0_i32_0 = arith.constant 0 : i32
    %c0_i32_1 = arith.constant 0 : i32
    return %c0_i32, %c0_i32_0 : i32, i32
  }
  func.func @transform_5(%arg0: i32) -> (i32, i32) {
    %c0_i32 = arith.constant 0 : i32
    %c0_i32_0 = arith.constant 0 : i32
    %c0_i32_1 = arith.constant 0 : i32
    return %c0_i32, %c0_i32_0 : i32, i32
  }
  func.func @transform_6(%arg0: i32) -> (i32, i32) {
    %c0_i32 = arith.constant 0 : i32
    %c0_i32_0 = arith.constant 0 : i32
    %c0_i32_1 = arith.constant 0 : i32
    return %c0_i32, %c0_i32_0 : i32, i32
  }
  func.func @transform_7(%arg0: i32) -> (i32, i32) {
    %c0_i32 = arith.constant 0 : i32
    %c0_i32_0 = arith.constant 0 : i32
    return %arg0, %c0_i32 : i32, i32
  }
}

</mosaic_0001>

<bundles_post_ra>
// kernel: conv_encoder_forward.1
= control target key start
LH: loop header
LB: loop body
LE: loop exit
PB: predicated region body
PF: predicated region fallthrough
CT: control target
= control target key end

     0   :  { %s793_s0 = inlined_call_operand.vmem [shape: f32[32,64], index: 0, kind: input, shape index: {}]   ;;  %s794_s1 = inlined_call_operand.vmem [shape: f32[64,64], index: 1, kind: input, shape index: {}]   ;;  %s795_s2 = inlined_call_operand.vmem [shape: f32[1,64], index: 2, kind: input, shape index: {}]   ;;  %s796_s3 = inlined_call_operand.vmem [shape: f32[64,32], index: 3, kind: input, shape index: {}]   ;;  %s797_s4 = inlined_call_operand.vmem [shape: f32[1,32], index: 4, kind: input, shape index: {}]   ;;  %s798_s5 = inlined_call_operand.vmem [shape: f32[512,128], index: 5, kind: input, shape index: {}]   ;;  %s799_s6 = inlined_call_operand.vmem [shape: f32[1,128], index: 6, kind: input, shape index: {}]   ;;  %s800_s7 = inlined_call_operand.hbm [shape: f32[2,128], index: 7, kind: output, shape index: {}]  }
   0x1   :  { %v38_v0 = vld [vmem:[%s794_s1 + $0x38] sm:$0xff]  ;;  %v37_v1 = vld [vmem:[%s794_s1 + $0x30] sm:$0xff]  ;;  %v36_v2 = vld [vmem:[%s794_s1 + $0x28] sm:$0xff] }
   0x2   :  { %64 = vmatpush.msra.mxu0 %v38_v0  ;;  %v35_v3 = vld [vmem:[%s794_s1 + $0x20] sm:$0xff] }
   0x4   :  { %65 = vmatpush.msra.mxu0 %v37_v1 }
   0x6   :  { %66 = vmatpush.msra.mxu0 %v36_v2 }
   0x7   :  { %12 = vsyncpa [#allocation5], 0  ;;  %v34_v4 = vld [vmem:[%s794_s1 + $0x18] sm:$0xff]  ;;  %v33_v5 = vld [vmem:[%s794_s1 + $0x10] sm:$0xff]  ;;  %vm43_vm0 = vcmask 523264   ;;  %vm146_vm1 = vcmask 261120  }
   0x8   :  { %67 = vmatpush.msra.mxu0 %v35_v3  ;;  %v96_v6 = vld [vmem:[%s796_s3 + $0x38] sm:$0xff]  ;;  %v95_v7 = vld [vmem:[%s796_s3 + $0x30] sm:$0xff]  ;;  %v32_v8 = vld [vmem:[%s794_s1 + $0x8] sm:$0xff]  ;;  %vm152_vm2 = vcmask 254976   ;;  %s454_s19 = smov 32   ;;  %vm159_vm3 = vcmask 517376  }
   0x9   :  { %121 = vmatpush.msra.mxu1 %v96_v6  ;;  %v94_v9 = vld [vmem:[%s796_s3 + $0x28] sm:$0xff]  ;;  %v31_v10 = vld [vmem:[%s794_s1] sm:$0xff]  ;;  %v92_v13 = vld [vmem:[%s796_s3 + $0x18] sm:$0xff]  ;;  %vm166_vm4 = vcmask 779776   ;;  %vm173_vm5 = vcmask 1042176   ;;  %s456_s13 = smov [#allocation4]  }
   0xa   :  { %68 = vmatpush.msra.mxu0 %v34_v4  ;;  %v93_v11 = vld [vmem:[%s796_s3 + $0x20] sm:$0xff]  ;;  %v28_v14 = vld [vmem:[%s793_s0 + $0x8] sm:$0xff]  ;;  %v29_v15 = vld [vmem:[%s793_s0 + $0x10] sm:$0xff]  ;;  %s401_s14 = sshll.u32 %s456_s13, 4  ;;  %s403_s17 = sshll.u32 %s800_s7, 4  ;;  %s402_s14 = int_to_ptr.vmem [resolvable:$true] %s401_s14  ;;  %s404_s17 = int_to_ptr.hbm [resolvable:$true] %s403_s17 }
   0xb   :  { %122 = vmatpush.msra.mxu1 %v95_v7  ;;  %v27_v12 = vld [vmem:[%s793_s0] sm:$0xff]  ;;  %v30_v16 = vld [vmem:[%s793_s0 + $0x18] sm:$0xff]  ;;  %v91_v17 = vld [vmem:[%s796_s3 + $0x10] sm:$0xff] }
   0xc   :  { %69 = vmatpush.msra.mxu0 %v33_v5  ;;  %v90_v18 = vld [vmem:[%s796_s3 + $0x8] sm:$0xff]  ;;  %v89_v19 = vld [vmem:[%s796_s3] sm:$0xff]  ;;  %s453_s3 = smov 64   ;;  %v251_v63 = vld [vmem:[%s798_s5 + $0x78] sm:$0xff] }
   0xd   :  { %123 = vmatpush.msra.mxu1 %v94_v9  ;;  %v424_v20 = vld [vmem:[%s795_s2] ss:$0 sm:$0xff]  ;;  %v267_v0 = vld [vmem:[%s798_s5 + $0xf8] sm:$0xff]  ;;  %314 = vmatpush.msra.mxu2 %v251_v63  ;;  %v250_v3 = vld [vmem:[%s798_s5 + $0x70] sm:$0xff] }
   0xe   :  { %70 = vmatpush.msra.mxu0 %v32_v8  ;;  %v425_v33 = vld [vmem:[%s797_s4] ss:$0 sm:$0xff]  ;;  %s455_s4 = smov 96   ;;  %v283_v1 = vld [vmem:[%s798_s5 + $0x178] sm:$0xff]  ;;  %334 = vmatpush.msra.mxu3 %v267_v0  ;;  %v266_v4 = vld [vmem:[%s798_s5 + $0xf0] sm:$0xff] }
   0xf   :  { %124 = vmatpush.msra.mxu1 %v93_v11  ;;  %v299_v2 = vld [vmem:[%s798_s5 + $0x1f8] sm:$0xff]  ;;  %v282_v5 = vld [vmem:[%s798_s5 + $0x170] sm:$0xff]  ;;  %v249_v7 = vld [vmem:[%s798_s5 + $0x68] sm:$0xff]  ;;  %315 = vmatpush.msra.mxu2 %v250_v3 }
  0x10   :  { %71 = vmatpush.msra.mxu0 %v31_v10  ;;  %v298_v6 = vld [vmem:[%s798_s5 + $0x1f0] sm:$0xff]  ;;  %335 = vmatpush.msra.mxu3 %v266_v4  ;;  %v265_v8 = vld [vmem:[%s798_s5 + $0xe8] sm:$0xff]  ;;  %v248_v11 = vld [vmem:[%s798_s5 + $0x60] sm:$0xff] }
  0x11   :  { %412 = vmatmul.msk.f32.vlgmr.msra.gmra.mxu0 %vm43_vm0, %v27_v12  ;;  %125 = vmatpush.msra.mxu1 %v92_v13  ;;  %v281_v9 = vld [vmem:[%s798_s5 + $0x168] sm:$0xff]  ;;  %v264_v12 = vld [vmem:[%s798_s5 + $0xe0] sm:$0xff] }
  0x12   :  { %354 = vmatpush.msrb.mxu0 %v283_v1  ;;  %v297_v10 = vld [vmem:[%s798_s5 + $0x1e8] sm:$0xff]  ;;  %316 = vmatpush.msra.mxu2 %v249_v7  ;;  %v236_v1 = vld [vmem:[%s798_s5] sm:$0xff] }
  0x13   :  { %126 = vmatpush.msra.mxu1 %v91_v17  ;;  %336 = vmatpush.msra.mxu3 %v265_v8  ;;  %v247_v17 = vld [vmem:[%s798_s5 + $0x58] sm:$0xff]  ;;  %v269_v63 = vld [vmem:[%s798_s5 + $0x108] sm:$0xff]  ;;  %v268_v3 = vld [vmem:[%s798_s5 + $0x100] sm:$0xff] }
  0x14   :  { %355 = vmatpush.msrb.mxu0 %v282_v5  ;;  %317 = vmatpush.msra.mxu2 %v248_v11  ;;  %v285_v0 = vld [vmem:[%s798_s5 + $0x188] sm:$0xff]  ;;  %v284_v4 = vld [vmem:[%s798_s5 + $0x180] sm:$0xff] }
  0x15   :  { %127 = vmatpush.msra.mxu1 %v90_v18  ;;  %337 = vmatpush.msra.mxu3 %v264_v12  ;;  %v263_v18 = vld [vmem:[%s798_s5 + $0xd8] sm:$0xff] }
  0x16   :  { %356 = vmatpush.msrb.mxu0 %v281_v9  ;;  %318 = vmatpush.msra.mxu2 %v247_v17 }
  0x17   :  { %128 = vmatpush.msra.mxu1 %v89_v19  ;;  %v279_v19 = vld [vmem:[%s798_s5 + $0x158] sm:$0xff]  ;;  %338 = vmatpush.msra.mxu3 %v263_v18 }
  0x19   :  { %413 = vmatmul.msk.f32.gmra.mxu0 %vm43_vm0, %v28_v14  ;;  %374 = vmatpush.msrb.mxu1 %v299_v2  ;;  %v280_v14 = vld [vmem:[%s798_s5 + $0x160] sm:$0xff] }
  0x1a   :  { %357 = vmatpush.msrb.mxu0 %v280_v14  ;;  %v252_v2 = vld [vmem:[%s798_s5 + $0x80] sm:$0xff] }
  0x1b   :  { %375 = vmatpush.msrb.mxu1 %v298_v6 }
  0x1c   :  { %358 = vmatpush.msrb.mxu0 %v279_v19 }
  0x1d   :  { %376 = vmatpush.msrb.mxu1 %v297_v10 }
  0x21   :  { %414 = vmatmul.msk.f32.gmra.mxu0 %vm43_vm0, %v29_v15  ;;  %v296_v15 = vld [vmem:[%s798_s5 + $0x1e0] sm:$0xff] }
  0x22   :  { %377 = vmatpush.msrb.mxu1 %v296_v15  ;;  %v426_v15 = vld [vmem:[%s799_s6] ss:$0 sm:$0xff] }
  0x29   :  { %415 = vmatmul.msk.f32.gmra.mxu0 %vm43_vm0, %v30_v16 }
  0x8e   :  { %v73_v21 = vpop.f32.mrf.mxu0 }
  0x8f   :  { %v74_v22 = vadd.f32 %v424_v20, %v73_v21  ;;  %v246_v21 = vld [vmem:[%s798_s5 + $0x50] sm:$0xff] }
  0x90   :  { %319 = vmatpush.msra.mxu2 %v246_v21 }
  0x91   :  { %v85_v23 = vmax.f32 %v74_v22, 0.0  ;;  %v262_v22 = vld [vmem:[%s798_s5 + $0xd0] sm:$0xff] }
  0x92   :  { %339 = vmatpush.msra.mxu3 %v262_v22 }
  0x93   :  { %416 = vmatmul.msk.f32.vlgmr.msra.gmra.mxu1 %vm43_vm0, %v85_v23  ;;  %v278_v23 = vld [vmem:[%s798_s5 + $0x150] sm:$0xff] }
  0x94   :  { %359 = vmatpush.msrb.mxu0 %v278_v23 }
  0x96   :  { %v76_v24 = vpop.f32.mrf.mxu0 }
  0x97   :  { %v77_v25 = vadd.f32 %v424_v20, %v76_v24  ;;  %v294_v24 = vld [vmem:[%s798_s5 + $0x1d0] sm:$0xff] }
  0x99   :  { %v86_v26 = vmax.f32 %v77_v25, 0.0  ;;  %v245_v25 = vld [vmem:[%s798_s5 + $0x48] sm:$0xff] }
  0x9a   :  { %320 = vmatpush.msra.mxu2 %v245_v25 }
  0x9b   :  { %417 = vmatmul.msk.f32.gmra.mxu1 %vm43_vm0, %v86_v26  ;;  %v261_v26 = vld [vmem:[%s798_s5 + $0xc8] sm:$0xff] }
  0x9c   :  { %340 = vmatpush.msra.mxu3 %v261_v26 }
  0x9e   :  { %v79_v27 = vpop.f32.mrf.mxu0 }
  0x9f   :  { %v80_v28 = vadd.f32 %v424_v20, %v79_v27  ;;  %v277_v27 = vld [vmem:[%s798_s5 + $0x148] sm:$0xff] }
  0xa0   :  { %360 = vmatpush.msrb.mxu0 %v277_v27 }
  0xa1   :  { %v87_v29 = vmax.f32 %v80_v28, 0.0  ;;  %v293_v28 = vld [vmem:[%s798_s5 + $0x1c8] sm:$0xff] }
  0xa3   :  { %418 = vmatmul.msk.f32.gmra.mxu1 %vm43_vm0, %v87_v29  ;;  %v244_v29 = vld [vmem:[%s798_s5 + $0x40] sm:$0xff] }
  0xa4   :  { %321 = vmatpush.msra.mxu2 %v244_v29 }
  0xa6   :  { %v82_v30 = vpop.f32.mrf.mxu0 }
  0xa7   :  { %v83_v31 = vadd.f32 %v424_v20, %v82_v30  ;;  %v295_v20 = vld [vmem:[%s798_s5 + $0x1d8] sm:$0xff]  ;;  %v260_v30 = vld [vmem:[%s798_s5 + $0xc0] sm:$0xff] }
  0xa8   :  { %378 = vmatpush.msrb.mxu1 %v295_v20  ;;  %341 = vmatpush.msra.mxu3 %v260_v30 }
  0xa9   :  { %v88_v32 = vmax.f32 %v83_v31, 0.0  ;;  %v276_v31 = vld [vmem:[%s798_s5 + $0x140] sm:$0xff] }
  0xaa   :  { %379 = vmatpush.msrb.mxu1 %v294_v24  ;;  %361 = vmatpush.msrb.mxu0 %v276_v31 }
  0xab   :  { %419 = vmatmul.msk.f32.gmra.mxu1 %vm43_vm0, %v88_v32  ;;  %v292_v32 = vld [vmem:[%s798_s5 + $0x1c0] sm:$0xff] }
  0xac   :  { %380 = vmatpush.msrb.mxu1 %v293_v28 }
  0xae   :  { %381 = vmatpush.msrb.mxu1 %v292_v32 }
 0x110   :  { %v130_v34 = vpop.f32.mrf.mxu1 }
 0x111   :  { %v131_v35 = vadd.f32 %v425_v33, %v130_v34 }
 0x113   :  { %v142_v36 = vmax.f32 %v131_v35, 0.0  ;;  %v243_v35 = vld [vmem:[%s798_s5 + $0x38] sm:$0xff] }
 0x114   :  { %322 = vmatpush.msra.mxu2 %v243_v35 }
 0x115   :  { %147 = vst.msk [vmem:[#allocation2] sm:$0xff] %vm146_vm1, %v142_v36  ;;  %v259_v36 = vld [vmem:[%s798_s5 + $0xb8] sm:$0xff] }
 0x116   :  { %342 = vmatpush.msra.mxu3 %v259_v36 }
 0x118   :  { %v133_v37 = vpop.f32.mrf.mxu1 }
 0x119   :  { %v134_v38 = vadd.f32 %v425_v33, %v133_v37  ;;  %v275_v37 = vld [vmem:[%s798_s5 + $0x138] sm:$0xff] }
 0x11a   :  { %362 = vmatpush.msrb.mxu0 %v275_v37 }
 0x11b   :  { %v143_v39 = vmax.f32 %v134_v38, 0.0  ;;  %v291_v38 = vld [vmem:[%s798_s5 + $0x1b8] sm:$0xff] }
 0x11c   :  { %v161_v40 = vld [vmem:[#allocation2 + $0x4] sm:$0x3]  ;;  %v154_v41 = vld [vmem:[#allocation2 + $0x2] sm:$0x3]  ;;  %v151_v42 = vld [vmem:[#allocation2] sm:$0x3]  ;;  %382 = vmatpush.msrb.mxu1 %v291_v38 }
 0x11d   :  { %148 = vst.msk [vmem:[#allocation2 + $0x8] sm:$0xff] %vm146_vm1, %v143_v39  ;;  %163 = vrot.lane.b32.xlu2 %v161_v40, %s453_s3  ;;  %156 = vrot.lane.b32.xlu0 %v154_v41, %s454_s19  ;;  %v168_v46 = vld [vmem:[#allocation2 + $0x6] sm:$0x3]  ;;  %v242_v39 = vld [vmem:[%s798_s5 + $0x30] sm:$0xff] }
 0x11e   :  { %153 = vst.msk [vmem:[#allocation3] sm:$0x3] %vm152_vm2, %v151_v42  ;;  %v258_v40 = vld [vmem:[%s798_s5 + $0xb0] sm:$0xff]  ;;  %323 = vmatpush.msra.mxu2 %v242_v39 }
 0x11f   :  { %v274_v41 = vld [vmem:[%s798_s5 + $0x130] sm:$0xff]  ;;  %343 = vmatpush.msra.mxu3 %v258_v40 }
 0x120   :  { %v136_v43 = vpop.f32.mrf.mxu1  ;;  %v290_v42 = vld [vmem:[%s798_s5 + $0x1b0] sm:$0xff]  ;;  %363 = vmatpush.msrb.mxu0 %v274_v41 }
 0x121   :  { %v137_v44 = vadd.f32 %v425_v33, %v136_v43  ;;  %v241_v43 = vld [vmem:[%s798_s5 + $0x28] sm:$0xff]  ;;  %383 = vmatpush.msrb.mxu1 %v290_v42 }
 0x122   :  { %324 = vmatpush.msra.mxu2 %v241_v43 }
 0x123   :  { %v144_v45 = vmax.f32 %v137_v44, 0.0  ;;  %v257_v44 = vld [vmem:[%s798_s5 + $0xa8] sm:$0xff] }
 0x124   :  { %v177_v47 = vld [vmem:[#allocation2 + $0xa] sm:$0x3]  ;;  %v175_v48 = vld [vmem:[#allocation2 + $0x8] sm:$0x3]  ;;  %v183_v53 = vld [vmem:[#allocation2 + $0xc] sm:$0x3]  ;;  %344 = vmatpush.msra.mxu3 %v257_v44 }
 0x125   :  { %149 = vst.msk [vmem:[#allocation2 + $0x10] sm:$0xff] %vm146_vm1, %v144_v45  ;;  %170 = vrot.lane.b32.xlu2 %v168_v46, %s455_s4  ;;  %179 = vrot.lane.b32.xlu0 %v177_v47, %s454_s19  ;;  %v189_v58 = vld [vmem:[#allocation2 + $0xe] sm:$0x3]  ;;  %v273_v45 = vld [vmem:[%s798_s5 + $0x128] sm:$0xff]  ;;  %v240_v47 = vld [vmem:[%s798_s5 + $0x20] sm:$0xff] }
 0x126   :  { %176 = vst.msk [vmem:[#allocation3 + $0x2] sm:$0x3] %vm152_vm2, %v175_v48  ;;  %v289_v46 = vld [vmem:[%s798_s5 + $0x1a8] sm:$0xff]  ;;  %v256_v48 = vld [vmem:[%s798_s5 + $0xa0] sm:$0xff]  ;;  %364 = vmatpush.msrb.mxu0 %v273_v45  ;;  %325 = vmatpush.msra.mxu2 %v240_v47 }
 0x127   :  { %384 = vmatpush.msrb.mxu1 %v289_v46  ;;  %345 = vmatpush.msra.mxu3 %v256_v48 }
 0x128   :  { %v139_v49 = vpop.f32.mrf.mxu1 }
 0x129   :  { %v140_v50 = vadd.f32 %v425_v33, %v139_v49  ;;  %v272_v49 = vld [vmem:[%s798_s5 + $0x120] sm:$0xff] }
 0x12a   :  { %365 = vmatpush.msrb.mxu0 %v272_v49 }
 0x12b   :  { %v145_v51 = vmax.f32 %v140_v50, 0.0  ;;  %v288_v50 = vld [vmem:[%s798_s5 + $0x1a0] sm:$0xff] }
 0x12c   :  { %v197_v52 = vld [vmem:[#allocation2 + $0x12] sm:$0x3]  ;;  %v203_v54 = vld [vmem:[#allocation2 + $0x14] sm:$0x3]  ;;  %v195_v55 = vld [vmem:[#allocation2 + $0x10] sm:$0x3]  ;;  %385 = vmatpush.msrb.mxu1 %v288_v50 }
 0x12d   :  { %150 = vst.msk [vmem:[#allocation2 + $0x18] sm:$0xff] %vm146_vm1, %v145_v51  ;;  %199 = vrot.lane.b32.xlu1 %v197_v52, %s454_s19  ;;  %185 = vrot.lane.b32.xlu2 %v183_v53, %s453_s3  ;;  %v209_v61 = vld [vmem:[#allocation2 + $0x16] sm:$0x3] }
 0x12e   :  { %205 = vrot.lane.b32.xlu0 %v203_v54, %s453_s3  ;;  %196 = vst.msk [vmem:[#allocation3 + $0x4] sm:$0x3] %vm152_vm2, %v195_v55  ;;  %v239_v52 = vld [vmem:[%s798_s5 + $0x18] sm:$0xff] }
 0x12f   :  { %v255_v53 = vld [vmem:[%s798_s5 + $0x98] sm:$0xff]  ;;  %326 = vmatpush.msra.mxu2 %v239_v52 }
 0x130   :  { %v271_v55 = vld [vmem:[%s798_s5 + $0x118] sm:$0xff]  ;;  %346 = vmatpush.msra.mxu3 %v255_v53 }
 0x131   :  { %366 = vmatpush.msrb.mxu0 %v271_v55 }
 0x134   :  { %v217_v56 = vld [vmem:[#allocation2 + $0x1a] sm:$0x3]  ;;  %v229_v57 = vld [vmem:[#allocation2 + $0x1e] sm:$0x3]  ;;  %v215_v59 = vld [vmem:[#allocation2 + $0x18] sm:$0x3] }
 0x135   :  { %219 = vrot.lane.b32.xlu1 %v217_v56, %s454_s19  ;;  %231 = vrot.lane.b32.xlu2 %v229_v57, %s455_s4  ;;  %216 = vst.msk [vmem:[#allocation3 + $0x6] sm:$0x3] %vm152_vm2, %v215_v59  ;;  %v223_v60 = vld [vmem:[#allocation2 + $0x1c] sm:$0x3]  ;;  %v287_v56 = vld [vmem:[%s798_s5 + $0x198] sm:$0xff]  ;;  %v238_v57 = vld [vmem:[%s798_s5 + $0x10] sm:$0xff] }
 0x136   :  { %191 = vrot.lane.b32.xlu0 %v189_v58, %s455_s4  ;;  %v254_v58 = vld [vmem:[%s798_s5 + $0x90] sm:$0xff]  ;;  %386 = vmatpush.msrb.mxu1 %v287_v56 }
 0x137   :  { %v270_v59 = vld [vmem:[%s798_s5 + $0x110] sm:$0xff]  ;;  %327 = vmatpush.msra.mxu2 %v238_v57  ;;  %347 = vmatpush.msra.mxu3 %v254_v58 }
 0x138   :  { %367 = vmatpush.msrb.mxu0 %v270_v59 }
 0x13a   :  { %368 = vmatpush.msrb.mxu0 %v269_v63 }
 0x13c   :  { %369 = vmatpush.msrb.mxu0 %v268_v3 }
 0x13d   :  { %225 = vrot.lane.b32.xlu1 %v223_v60, %s453_s3  ;;  %v286_v60 = vld [vmem:[%s798_s5 + $0x190] sm:$0xff] }
 0x13e   :  { %387 = vmatpush.msrb.mxu1 %v286_v60 }
 0x140   :  { %388 = vmatpush.msrb.mxu1 %v285_v0 }
 0x142   :  { %389 = vmatpush.msrb.mxu1 %v284_v4 }
 0x145   :  { %211 = vrot.lane.b32.xlu1 %v209_v61, %s455_s4  ;;  %v237_v61 = vld [vmem:[%s798_s5 + $0x8] sm:$0xff] }
 0x146   :  { %328 = vmatpush.msra.mxu2 %v237_v61 }
 0x148   :  { %329 = vmatpush.msra.mxu2 %v236_v1 }
 0x177   :  { %v164_v62 = vpop.permute.xlu2 %163 }
 0x17f   :  { %v171_v13 = vpop.permute.xlu2 %170 }
 0x187   :  { %v186_v34 = vpop.permute.xlu2 %185 }
 0x18f   :  { %v157_v16 = vpop.permute.xlu0 %156  ;;  %v232_v8 = vpop.permute.xlu2 %231 }
 0x190   :  { %160 = vst.msk [vmem:[#allocation3] sm:$0x3] %vm159_vm3, %v157_v16 }
 0x191   :  { %167 = vst.msk [vmem:[#allocation3] sm:$0x3] %vm166_vm4, %v164_v62  ;;  %v253_v62 = vld [vmem:[%s798_s5 + $0x88] sm:$0xff] }
 0x192   :  { %174 = vst.msk [vmem:[#allocation3] sm:$0x3] %vm173_vm5, %v171_v13  ;;  %348 = vmatpush.msra.mxu3 %v253_v62 }
 0x194   :  { %349 = vmatpush.msra.mxu3 %v252_v2 }
 0x197   :  { %v180_v33 = vpop.permute.xlu0 %179 }
 0x198   :  { %182 = vst.msk [vmem:[#allocation3 + $0x2] sm:$0x3] %vm159_vm3, %v180_v33 }
 0x199   :  { %188 = vst.msk [vmem:[#allocation3 + $0x2] sm:$0x3] %vm166_vm4, %v186_v34 }
 0x19f   :  { %v200_v51 = vpop.permute.xlu1 %199 }
 0x1a0   :  { %202 = vst.msk [vmem:[#allocation3 + $0x4] sm:$0x3] %vm159_vm3, %v200_v51  ;;  %v206_v54 = vpop.permute.xlu0 %205 }
 0x1a1   :  { %208 = vst.msk [vmem:[#allocation3 + $0x4] sm:$0x3] %vm166_vm4, %v206_v54 }
 0x1a7   :  { %v220_v5 = vpop.permute.xlu1 %219 }
 0x1a8   :  { %222 = vst.msk [vmem:[#allocation3 + $0x6] sm:$0x3] %vm159_vm3, %v220_v5  ;;  %v192_v6 = vpop.permute.xlu0 %191 }
 0x1a9   :  { %194 = vst.msk [vmem:[#allocation3 + $0x2] sm:$0x3] %vm173_vm5, %v192_v6 }
 0x1af   :  { %v226_v7 = vpop.permute.xlu1 %225 }
 0x1b0   :  { %228 = vst.msk [vmem:[#allocation3 + $0x6] sm:$0x3] %vm166_vm4, %v226_v7 }
 0x1b1   :  { %234 = vst.msk [vmem:[#allocation3 + $0x6] sm:$0x3] %vm173_vm5, %v232_v8 }
 0x1b7   :  { %v212_v9 = vpop.permute.xlu1 %211 }
 0x1b8   :  { %214 = vst.msk [vmem:[#allocation3 + $0x4] sm:$0x3] %vm173_vm5, %v212_v9 }
 0x1bf   :  { %v235_v10 = vld [vmem:[#allocation3] sm:$0xff] }
 0x1c0   :  { %305 = vst [vmem:[#allocation1] ss:$4 sm:$0xff] %v235_v10 }
 0x1c7   :  { %v306_v11 = vld.sshfl [vmem:[#allocation1] sm:$0xff pattern:$0x73625140]  ;;  %v307_v12 = vld.sshfl [vmem:[#allocation1 + $0x8] sm:$0xff pattern:$0x73625140] }
 0x1c8   :  { %330 = vmatmul.f32.vlgmr.msra.gmra.mxu2 %v306_v11  ;;  %350 = vmatmul.f32.vlgmr.msra.gmra.mxu3 %v307_v12  ;;  %v308_v13 = vld.sshfl [vmem:[#allocation1 + $0x10] sm:$0xff pattern:$0x73625140]  ;;  %v309_v14 = vld.sshfl [vmem:[#allocation1 + $0x18] sm:$0xff pattern:$0x73625140] }
 0x1c9   :  { %370 = vmatmul.f32.vlgmr.msrb.gmra.mxu0 %v308_v13  ;;  %390 = vmatmul.f32.vlgmr.msrb.gmra.mxu1 %v309_v14 }
 0x246   :  { %v371_v20 = vpop.f32.mrf.mxu0  ;;  %v391_v22 = vpop.f32.mrf.mxu1 }
 0x24b   :  { %v331_v16 = vpop.f32.mrf.mxu2  ;;  %v351_v18 = vpop.f32.mrf.mxu3 }
 0x24c   :  { %v332_v17 = vadd.f32 %v426_v15, %v331_v16 }
 0x24e   :  { %v352_v19 = vadd.f32 %v351_v18, %v332_v17 }
 0x250   :  { %v372_v21 = vadd.f32 %v371_v20, %v352_v19 }
 0x252   :  { %v392_v23 = vadd.f32 %v391_v22, %v372_v21 }
 0x254   :  { %v394_v24 = vmax.f32 %v392_v23, 0.0 }
 0x256   :  { %395 = vst [vmem:[#allocation4] sm:$0x3] %v394_v24 }
 0x257   :  { %406 = dma.vmem_to_hbm [thread:$0]  %s402_s14, 32, %s404_s17, [#allocation5]  }
 0x258   :  { %451 = dma.done.wait [#allocation5], 32  }
 0x259   :  { %452 = vsyncadd [#allocation5], 4294967264 }
 0x25a   :  { %411 = vsyncpa [#allocation5], 1 }

</bundles_post_ra>
